<compile_context>
chip_gen: v5e
topology: v5e:2x2
jax: 0.10.0
libtpu: 0.0.40
codegen_flags: <defaults>
</compile_context>

<pallas_src>
import jax
import jax.numpy as jnp
from jax.experimental import pallas as pl
from jax.experimental.pallas import tpu as pltpu


def _le_kernel(x_ref, target_ref, pred_ref):
    """Single-pass LE block kernel.

    x_ref      : (bc_tile, T,   H,  W )  one VMEM block of the input
    target_ref : (bc_tile, T-2, Hc, Wc)  x[:, 2:, c:H-c, c:W-c]
    pred_ref   : (bc_tile, T-2, Hc, Wc)  (2*x[:,1:-1] - x[:,:-2]) cropped
    """
    Tout, Hc, Wc = pred_ref.shape[1], pred_ref.shape[2], pred_ref.shape[3]
    H, W = x_ref.shape[2], x_ref.shape[3]
    ch = (H - Hc) // 2
    cw = (W - Wc) // 2

    # Spatial crop once (static slices), then cheap leading-axis temporal slices.
    xc = x_ref[:, :, ch:ch + Hc, cw:cw + Wc]          # (bc, T, Hc, Wc)
    prev = xc[:, 0:Tout]                              # x[t]
    cur = xc[:, 1:1 + Tout]                           # x[t+1]
    target_ref[...] = xc[:, 2:2 + Tout]               # x[t+2]
    # weakly-typed 2 keeps the computation in the input dtype (f32 / bf16 / ...)
    pred_ref[...] = 2 * cur - prev


def _vmem_capacity_bytes():
    """Per-core VMEM capacity; conservative v7x default if the query fails."""
    try:
        info = pltpu.get_tpu_info()
        cap = getattr(info, "vmem_capacity_bytes", None)
        if cap:
            return int(cap)
    except Exception:
        pass
    return 64 * 1024 * 1024  # v7x is the most constrained generation


def _pick_bc_tile(BC, bytes_per_bc, budget_bytes, want_min_blocks=2):
    """Largest divisor of BC whose block fits the budget, keeping >=2 grid
    blocks when BC >= 2 (v7x has 2 TensorCores; also enables pipelining)."""
    best = 1
    for d in range(1, BC + 1):
        if BC % d != 0:
            continue
        if d * bytes_per_bc > budget_bytes:
            continue
        if BC >= want_min_blocks and (BC // d) < want_min_blocks:
            continue
        best = max(best, d)
    return best


def le_forward(x, space_crop=17):
    """JAX/Pallas equivalent of LE(c=space_crop).forward(x).

    x: (B, C, T, H, W) float array.
    Returns (target, pred), each of shape (B, C, T-2, H-2c, W-2c).
    """
    B, C, T, H, W = x.shape
    c = space_crop
    Tout, Hc, Wc = T - 2, H - 2 * c, W - 2 * c
    assert Tout > 0 and Hc > 0 and Wc > 0, f"invalid crop/shape: {x.shape}, c={c}"

    BC = B * C
    x_flat = x.reshape(BC, T, H, W)
    itemsize = jnp.dtype(x.dtype).itemsize

    # Per-BC-row bytes of one grid step: input block + two output blocks.
    bytes_per_bc = (T * H * W + 2 * Tout * Hc * Wc) * itemsize

    cap = _vmem_capacity_bytes()
    # ~8 MiB blocks on v7x (64 MiB VMEM), ~16 MiB on v5e/v6e (128 MiB VMEM).
    budget = max(cap // 8, 2 * 1024 * 1024)
    bc_tile = _pick_bc_tile(BC, bytes_per_bc, budget)

    block_bytes = bc_tile * bytes_per_bc
    headroom = 4 * 1024 * 1024
    needed = 2 * block_bytes + headroom            # double-buffered pipeline
    hard_cap = int(0.9 * cap)
    if needed > hard_cap:
        # TODO(synk): add a T-halo tiling path (2-frame halo) for videos whose
        # single-BC (T, H, W) slab exceeds VMEM; for now fail loudly instead of
        # silently overflowing VMEM.
        raise ValueError(
            f"LE block for a single (T={T}, H={H}, W={W}) slab needs "
            f"~{needed / 2**20:.1f} MiB VMEM, exceeding {hard_cap / 2**20:.1f} MiB "
            f"available on this TPU generation."
        )
    vmem_limit = min(max(needed, 32 * 1024 * 1024), hard_cap)

    grid = (BC // bc_tile,)

    out_shapes = (
        jax.ShapeDtypeStruct((BC, Tout, Hc, Wc), x.dtype),  # target
        jax.ShapeDtypeStruct((BC, Tout, Hc, Wc), x.dtype),  # pred
    )
    out_block = pl.BlockSpec((bc_tile, Tout, Hc, Wc), lambda b: (b, 0, 0, 0))

    target_flat, pred_flat = pl.pallas_call(
        _le_kernel,
        out_shape=out_shapes,
        grid_spec=pltpu.PrefetchScalarGridSpec(
            num_scalar_prefetch=0,
            grid=grid,
            in_specs=[
                pl.BlockSpec((bc_tile, T, H, W), lambda b: (b, 0, 0, 0)),
            ],
            out_specs=(out_block, out_block),
        ),
        compiler_params=pltpu.CompilerParams(
            dimension_semantics=("parallel",),
            vmem_limit_bytes=vmem_limit,
        ),
    )(x_flat)

    target = target_flat.reshape(B, C, Tout, Hc, Wc)
    pred = pred_flat.reshape(B, C, Tout, Hc, Wc)
    return target, pred


def le_forward_ref(x, space_crop=17):
    """Pure-JAX reference mirroring the PyTorch module."""
    H, W = x.shape[-2:]
    c = space_crop
    target = x[:, :, 2:]
    current = x[:, :, 1:-1]
    previous = x[:, :, :-2]
    pred = 2 * current - previous
    target = target[:, :, :, c:H - c, c:W - c]
    pred = pred[:, :, :, c:H - c, c:W - c]
    return target, pred


if __name__ == "__main__":
    # Small shapes consistent with a (B, C, T, H, W) video input.
    B, C, T, H, W = 2, 4, 8, 16, 16
    space_crop = 2  # default c=17 needs H,W > 34; use a small crop for small frames

    key = jax.random.PRNGKey(0)
    x = jax.random.normal(key, (B, C, T, H, W), dtype=jnp.float32)

    target, pred = le_forward(x, space_crop=space_crop)
    target = jax.block_until_ready(target)
    pred = jax.block_until_ready(pred)

    target_ref, pred_ref = le_forward_ref(x, space_crop=space_crop)

    assert target.shape == (B, C, T - 2, H - 2 * space_crop, W - 2 * space_crop)
    assert pred.shape == target.shape
    assert jnp.allclose(target, target_ref, atol=1e-6), "target mismatch"
    assert jnp.allclose(pred, pred_ref, atol=1e-6), "pred mismatch"

    print("KERNEL_OK")
</pallas_src>

<mosaic_0001>
module attributes {stable_mosaic.version = 11 : i64} {
  func.func @_le_kernel(%arg0: i32, %arg1: memref<4x8x16x16xf32, #tpu.memory_space<vmem>>, %arg2: memref<4x6x12x12xf32, #tpu.memory_space<vmem>>, %arg3: memref<4x6x12x12xf32, #tpu.memory_space<vmem>>) attributes {dimension_semantics = [#tpu.dimension_semantics<parallel>], iteration_bounds = array<i64: 2>, scalar_prefetch = 0 : i64, scratch_operands = 0 : i64, tpu.core_type = #tpu.core_type<tc>, window_params = [{transform_indices = @transform_0, window_bounds = array<i64: 4, 8, 16, 16>}, {transform_indices = @transform_1, window_bounds = array<i64: 4, 6, 12, 12>}, {transform_indices = @transform_2, window_bounds = array<i64: 4, 6, 12, 12>}]} {
    %c0 = arith.constant 0 : index
    %c0_0 = arith.constant 0 : index
    %c2 = arith.constant 2 : index
    %c2_1 = arith.constant 2 : index
    %0 = vector.load %arg1[%c0, %c0_0, %c2, %c2_1] : memref<4x8x16x16xf32, #tpu.memory_space<vmem>>, vector<4x8x12x12xf32>
    %1 = vector.extract_strided_slice %0 {offsets = [0, 0, 0, 0], sizes = [4, 6, 12, 12], strides = [1, 1, 1, 1]} : vector<4x8x12x12xf32> to vector<4x6x12x12xf32>
    %2 = vector.extract_strided_slice %0 {offsets = [0, 1, 0, 0], sizes = [4, 6, 12, 12], strides = [1, 1, 1, 1]} : vector<4x8x12x12xf32> to vector<4x6x12x12xf32>
    %3 = vector.extract_strided_slice %0 {offsets = [0, 2, 0, 0], sizes = [4, 6, 12, 12], strides = [1, 1, 1, 1]} : vector<4x8x12x12xf32> to vector<4x6x12x12xf32>
    %c0_2 = arith.constant 0 : index
    %c0_3 = arith.constant 0 : index
    %c0_4 = arith.constant 0 : index
    %c0_5 = arith.constant 0 : index
    %4 = vector.load %arg2[%c0_2, %c0_3, %c0_4, %c0_5] : memref<4x6x12x12xf32, #tpu.memory_space<vmem>>, vector<4x6x12x12xf32>
    tpu.vector_store %arg2[%c0_2, %c0_3, %c0_4, %c0_5], %3 {strides = array<i32>} : memref<4x6x12x12xf32, #tpu.memory_space<vmem>>, vector<4x6x12x12xf32>,
    %cst = arith.constant 2.000000e+00 : f32
    %5 = vector.broadcast %cst : f32 to vector<4x6x12x12xf32>
    %6 = arith.mulf %5, %2 : vector<4x6x12x12xf32>
    %7 = arith.subf %6, %1 : vector<4x6x12x12xf32>
    %c0_6 = arith.constant 0 : index
    %c0_7 = arith.constant 0 : index
    %c0_8 = arith.constant 0 : index
    %c0_9 = arith.constant 0 : index
    %8 = vector.load %arg3[%c0_6, %c0_7, %c0_8, %c0_9] : memref<4x6x12x12xf32, #tpu.memory_space<vmem>>, vector<4x6x12x12xf32>
    tpu.vector_store %arg3[%c0_6, %c0_7, %c0_8, %c0_9], %7 {strides = array<i32>} : memref<4x6x12x12xf32, #tpu.memory_space<vmem>>, vector<4x6x12x12xf32>,
    return
  }
  func.func @transform_0(%arg0: i32) -> (i32, i32, i32, i32) {
    %c0_i32 = arith.constant 0 : i32
    %c0_i32_0 = arith.constant 0 : i32
    %c0_i32_1 = arith.constant 0 : i32
    %c0_i32_2 = arith.constant 0 : i32
    return %arg0, %c0_i32, %c0_i32_0, %c0_i32_1 : i32, i32, i32, i32
  }
  func.func @transform_1(%arg0: i32) -> (i32, i32, i32, i32) {
    %c0_i32 = arith.constant 0 : i32
    %c0_i32_0 = arith.constant 0 : i32
    %c0_i32_1 = arith.constant 0 : i32
    %c0_i32_2 = arith.constant 0 : i32
    return %arg0, %c0_i32, %c0_i32_0, %c0_i32_1 : i32, i32, i32, i32
  }
  func.func @transform_2(%arg0: i32) -> (i32, i32, i32, i32) {
    %c0_i32 = arith.constant 0 : i32
    %c0_i32_0 = arith.constant 0 : i32
    %c0_i32_1 = arith.constant 0 : i32
    %c0_i32_2 = arith.constant 0 : i32
    return %arg0, %c0_i32, %c0_i32_0, %c0_i32_1 : i32, i32, i32, i32
  }
}

</mosaic_0001>

<bundles_post_ra>
// kernel: tpu_custom_call.1
= control target key start
LH: loop header
LB: loop body
LE: loop exit
PB: predicated region body
PF: predicated region fallthrough
CT: control target
= control target key end

     0   :  { %8 = vsyncpa [#allocation3], 0  ;;  %s1730_s0 = inlined_call_operand.hbm [shape: f32[8,8,16,16], index: 0, kind: input, shape index: {}]   ;;  %s1731_s1 = inlined_call_operand.vmem [shape: f32[8,6,12,12], index: 1, kind: output, shape index: {0}]   ;;  %s1732_s2 = inlined_call_operand.vmem [shape: f32[8,6,12,12], index: 2, kind: output, shape index: {1}]  }
   0x1   :  { %10 = vsyncpa [#allocation3 + $0x1], 0  ;;  %s1079_s9 = smov 0   ;;  %s1081_s10 = smov 0  }
   0x2   :  { %s1083_s11 = smov 0   ;;  %s1085_s12 = smov 0  }
   0x3 LB: > { %s934_s13 = sadd.s32 4294967295, %s1059_s12   ;;  %s1099_s14 = sadd.s32 1, %s1059_s12   ;;  %s1059_s12 = sphi %s1085_s12, %s1739_s12   ;;  %s1055_s11 = sphi %s1083_s11, %s1738_s11   ;;  %s1051_s10 = sphi %s1081_s10, %s1737_s10   ;;  %s1047_s9 = sphi %s1079_s9, %s1736_s9  }
   0x4   : > { %s20_s15 = ssub.s32 %s1059_s12, %s1099_s14  ;;  %s23_s16 = sadd.s32 1, %s1055_s11 }
   0x5   : > { %p21_p0 = scmp.eq.s32.totalorder %s20_s15, 0  ;;  %p30_p1 = scmp.ne.s32.totalorder %s1055_s11, %s1051_s10 }
   0x6   : > { %p31_p2 = scmp.eq.s32.totalorder %s1059_s12, 0  ;;  %p36_p3 = scmp.ne.s32.totalorder %s1051_s10, %s1047_s9 }
   0x7   : > { %s1109_s17 = scalar_select %p21_p0, %s1055_s11, %s23_s16  }
   0x8   : > { %p1111_p4 = por %p31_p2, %p30_p1  ;;  %p37_p5 = scmp.eq.s32.totalorder %s934_s13, 0 }
   0x9   : > { %p959_p6 = scmp.lt.s32.totalorder %s1059_s12, 2  ;;  %s112_s20 = sand.u32 1, %s1055_s11  }
   0xa   : > { %p1118_p7 = por %p37_p5, %p36_p3  ;;  %s938_s21 = sshll.u32 %s112_s20, 9 }
   0xb   : > { %s951_s22 = sshll.u32 %s1059_s12, 9  ;;  %s116_s26 = scalar_lea.vmem [#allocation2], %s938_s21 }
   0xc   : > { %s122_s25 = scalar_lea.hbm %s1730_s0, %s951_s22  ;;  %s125_s27 = sshll.u32 %s116_s26, 4  ;;  %s126_s27 = int_to_ptr.vmem [resolvable:$true] %s125_s27 }
   0xd   : > { %s123_s28 = sshll.u32 %s122_s25, 4  ;;  %p1129_p8 = pnand %p959_p6, %p1111_p4  ;;  %s124_s28 = int_to_ptr.hbm [resolvable:$true] %s123_s28 }
   0xe   : > { %p942_p9 = scmp.ge.s32.totalorder %s1059_s12, 1  ;;  %s113_s30 = scalar_lea.sflag [#allocation3], %s112_s20 }
   0xf   : > { %s995_s3 = sshra.s32 %s124_s28, 4  ;;  %p999_p11 = pneg %p1129_p8  ;;  %s996_s3 = int_to_ptr.hbm [resolvable:$true] %s995_s3 }
  0x10   : > { %s997_s4 = scalar_lea.hbm %s996_s3, 512  ;;  %s1002_s7 = scalar_lea.hbm %s1730_s0, 1024 }
  0x11   : > { %p998_p10 = scmp.ne.s32.totalorder %s996_s3, %s997_s4  ;;  %p1003_p0 = scmp.lt.s32.totalorder %s996_s3, %s1730_s0 }
  0x12   : > { %p1004_p1 = scmp.lt.s32.totalorder %s1002_s7, %s997_s4 }
  0x13   : > { %p1000_p12 = pnand %p999_p11, %p998_p10 }
  0x14   : > { %p1005_p2 = por %p1004_p1, %p1003_p0 }
  0x15   : > { %p1001_p13 = pneg %p1000_p12 }
  0x17   : > { %p1006_p3 = pnand %p1005_p2, %p1001_p13 }
  0x19   : > { %1009 = shalt.err (!%p1006_p3)
}
  0x1a   : > { %s1061_s15 = smov 128   ;;  %s1062_s16 = smov 8  }
  0x1b   : > { %958 = dma.hbm_to_vmem [thread:$0]  (!%p1129_p8), %s124_s28, 8192, %s126_s27, %s113_s30, %s1061_s15, %s1061_s15, %s1062_s16  }
  0x1c   : > { %p133_p4 = scmp.lt.s32.totalorder %s1059_s12, 3 }
  0x1e   : > { %p134_p5 = pnand %p942_p9, %p133_p4 }
  0x1f   : > { %s139_s18 = sand.u32 (!%p134_p5), 1, %s1051_s10  }
  0x20   : > { %137 = sbr.rel (%p134_p5) target bundleno = 404 (0x194), region = 24  ;;  %s943_s20 = sshll.u32 (!%p134_p5), %s139_s18, 9 }
  0x21   : > { %s140_s21 = scalar_lea.sflag (!%p134_p5), [#allocation3], %s139_s18  ;;  %s1148_s22 = scalar_lea.vmem (!%p134_p5), [#allocation2], %s943_s20 }
  0x25   : > { %1042 = dma.done.wait (%p1118_p7), %s140_s21, 8192  }
  0x26   : > { %1044 = vsyncadd (%p1118_p7), %s140_s21, 4294959104  ;;  %v1155_v0 = vld [vmem:[%s1148_s22 + $0x32] sm:$0xff]  ;;  %v1158_v1 = vld [vmem:[%s1148_s22 + $0x22] sm:$0xff]  ;;  %s1063_s23 = smov 126   ;;  %s944_s19 = sshll.u32 %s934_s13, 2  ;;  %vm443_vm0 = vcmask 97280  }
  0x27   : > { %303 = vrot.lane.b32.xlu1 %v1155_v0, %s1063_s23  ;;  %299 = vrot.lane.b32.xlu0 %v1158_v1, %s1063_s23  ;;  %v1165_v2 = vld [vmem:[%s1148_s22 + $0x42] sm:$0xff]  ;;  %v1170_v3 = vld [vmem:[%s1148_s22 + $0x3a] sm:$0xf]  ;;  %p174_p6 = scmp.lt.s32.totalorder %s944_s19, 7  ;;  %vm445_vm1 = vcmask 93184   ;;  %v495_v60 = vmul.f32 2.0, %v1158_v1 }
  0x28   : > { %307 = vrot.lane.b32.xlu2 %v1165_v2, %s1063_s23  ;;  %v1173_v4 = vld [vmem:[%s1148_s22 + $0x2a] sm:$0xf]  ;;  %v1185_v6 = vld [vmem:[%s1148_s22 + $0x5a] sm:$0xf]  ;;  %v1188_v7 = vld [vmem:[%s1148_s22 + $0x52] sm:$0xff] }
  0x29   : > { %v1176_v5 = vld [vmem:[%s1148_s22 + $0x4a] sm:$0xf]  ;;  %v1191_v8 = vld [vmem:[%s1148_s22 + $0x62] sm:$0xff]  ;;  %v201_v9 = vld [vmem:[%s1148_s22 + $0x72] sm:$0xff]  ;;  %s1741_s19 = smov (!%p174_p6, %s944_s19), 7 }
  0x2a   : > { %v1201_v10 = vld [vmem:[%s1148_s22 + $0x6a] sm:$0xf]  ;;  %v202_v11 = vld [vmem:[%s1148_s22 + $0x7a] sm:$0xf]  ;;  %v1212_v13 = vld [vmem:[%s1148_s22 + $0xa2] sm:$0xff]  ;;  %s952_s12 = smul.u32 96, %s1741_s19 }
  0x2b   : > { %v1209_v12 = vld [vmem:[%s1148_s22 + $0xaa] sm:$0xf]  ;;  %v1215_v14 = vld [vmem:[%s1148_s22 + $0xb2] sm:$0xff]  ;;  %v1224_v15 = vld [vmem:[%s1148_s22 + $0xc2] sm:$0xff] }
  0x2c   : > { %v1227_v16 = vld [vmem:[%s1148_s22 + $0xba] sm:$0xf]  ;;  %v1230_v17 = vld [vmem:[%s1148_s22 + $0xca] sm:$0xf]  ;;  %v1242_v19 = vld [vmem:[%s1148_s22 + $0xd2] sm:$0xff]  ;;  %s1326_s25 = scalar_lea.vmem %s1731_s1, %s952_s12  ;;  %s1578_s28 = scalar_lea.vmem %s1732_s2, %s952_s12 }
  0x2d   : > { %v1239_v18 = vld [vmem:[%s1148_s22 + $0xda] sm:$0xf]  ;;  %v1245_v20 = vld [vmem:[%s1148_s22 + $0xe2] sm:$0xff]  ;;  %v217_v21 = vld [vmem:[%s1148_s22 + $0xf2] sm:$0xff] }
  0x2e   : > { %v1255_v22 = vld [vmem:[%s1148_s22 + $0xea] sm:$0xf]  ;;  %v218_v23 = vld [vmem:[%s1148_s22 + $0xfa] sm:$0xf]  ;;  %v1266_v25 = vld [vmem:[%s1148_s22 + $0x122] sm:$0xff] }
  0x2f   : > { %305 = vrot.lane.b32.xlu1 %v1170_v3, %s1063_s23  ;;  %301 = vrot.lane.b32.xlu0 %v1173_v4, %s1063_s23  ;;  %v1263_v24 = vld [vmem:[%s1148_s22 + $0x12a] sm:$0xf]  ;;  %v1269_v26 = vld [vmem:[%s1148_s22 + $0x132] sm:$0xff] }
  0x30   : > { %309 = vrot.lane.b32.xlu2 %v1176_v5, %s1063_s23  ;;  %v1278_v27 = vld [vmem:[%s1148_s22 + $0x142] sm:$0xff]  ;;  %v1281_v28 = vld [vmem:[%s1148_s22 + $0x13a] sm:$0xf]  ;;  %v1284_v29 = vld [vmem:[%s1148_s22 + $0x14a] sm:$0xf] }
  0x31   : > { %v1295_v30 = vld [vmem:[%s1148_s22 + $0x15a] sm:$0xf]  ;;  %v1298_v31 = vld [vmem:[%s1148_s22 + $0x152] sm:$0xff]  ;;  %v1301_v32 = vld [vmem:[%s1148_s22 + $0x162] sm:$0xff] }
  0x32   : > { %v233_v33 = vld [vmem:[%s1148_s22 + $0x172] sm:$0xff]  ;;  %v1313_v34 = vld [vmem:[%s1148_s22 + $0x16a] sm:$0xf]  ;;  %v234_v35 = vld [vmem:[%s1148_s22 + $0x17a] sm:$0xf] }
  0x33   : > { %v1329_v37 = vld [vmem:[%s1148_s22 + $0x1aa] sm:$0xf]  ;;  %v1332_v38 = vld [vmem:[%s1148_s22 + $0x1a2] sm:$0xff]  ;;  %v1337_v39 = vld [vmem:[%s1148_s22 + $0x1b2] sm:$0xff] }
  0x34   : > { %v1346_v41 = vld [vmem:[%s1148_s22 + $0x1c2] sm:$0xff]  ;;  %v1349_v42 = vld [vmem:[%s1148_s22 + $0x1ba] sm:$0xf]  ;;  %v1354_v43 = vld [vmem:[%s1148_s22 + $0x1ca] sm:$0xf] }
  0x35   : > { %v1363_v45 = vld [vmem:[%s1148_s22 + $0x1da] sm:$0xf]  ;;  %v1366_v46 = vld [vmem:[%s1148_s22 + $0x1d2] sm:$0xff]  ;;  %v1371_v47 = vld [vmem:[%s1148_s22 + $0x1e2] sm:$0xff] }
  0x36   : > { %v1384_v50 = vld [vmem:[%s1148_s22 + $0x1ea] sm:$0xf]  ;;  %v249_v52 = vld [vmem:[%s1148_s22 + $0x1f2] sm:$0xff]  ;;  %v190_v53 = vld [vmem:[%s1148_s22 + $0x1a] sm:$0xf] }
  0x37   : > { %313 = vrot.lane.b32.xlu1 %v1185_v6, %s1063_s23  ;;  %311 = vrot.lane.b32.xlu0 %v1188_v7, %s1063_s23  ;;  %v189_v54 = vld [vmem:[%s1148_s22 + $0x12] sm:$0xff]  ;;  %v250_v55 = vld [vmem:[%s1148_s22 + $0x1fa] sm:$0xf]  ;;  %v494_v56 = vmul.f32 2.0, %v190_v53 }
  0x38   : > { %315 = vrot.lane.b32.xlu2 %v1191_v8, %s1063_s23  ;;  %v493_v57 = vmul.f32 2.0, %v189_v54  ;;  %v188_v58 = vld [vmem:[%s1148_s22 + $0xa] sm:$0xf]  ;;  %v187_v59 = vld [vmem:[%s1148_s22 + $0x2] sm:$0xff] }
  0x39   : > { %v542_v63 = vsub.f32 %v494_v56, %v188_v58 }
  0x3f   : > { %319 = vrot.lane.b32.xlu1 %v201_v9, %s1063_s23  ;;  %317 = vrot.lane.b32.xlu0 %v1201_v10, %s1063_s23  ;;  %v541_v9 = vsub.f32 %v493_v57, %v187_v59  ;;  %v502_v59 = vmul.f32 2.0, %v1185_v6 }
  0x40   : > { %321 = vrot.lane.b32.xlu2 %v202_v11, %s1063_s23 }
  0x47   : > { %325 = vrot.lane.b32.xlu1 %v1209_v12, %s1063_s23  ;;  %323 = vrot.lane.b32.xlu0 %v1212_v13, %s1063_s23 }
  0x48   : > { %327 = vrot.lane.b32.xlu2 %v1215_v14, %s1063_s23 }
  0x4f   : > { %331 = vrot.lane.b32.xlu1 %v1224_v15, %s1063_s23  ;;  %329 = vrot.lane.b32.xlu0 %v1227_v16, %s1063_s23 }
  0x50   : > { %333 = vrot.lane.b32.xlu2 %v1230_v17, %s1063_s23 }
  0x57   : > { %337 = vrot.lane.b32.xlu1 %v1239_v18, %s1063_s23  ;;  %335 = vrot.lane.b32.xlu0 %v1242_v19, %s1063_s23 }
  0x58   : > { %339 = vrot.lane.b32.xlu2 %v1245_v20, %s1063_s23 }
  0x5f   : > { %343 = vrot.lane.b32.xlu1 %v217_v21, %s1063_s23  ;;  %341 = vrot.lane.b32.xlu0 %v1255_v22, %s1063_s23  ;;  %v543_v21 = vsub.f32 %v495_v60, %v189_v54  ;;  %v500_v54 = vmul.f32 2.0, %v1176_v5  ;;  %v503_v60 = vmul.f32 2.0, %v1191_v8  ;;  %v550_v8 = vsub.f32 %v502_v59, %v1176_v5 }
  0x60   : > { %345 = vrot.lane.b32.xlu2 %v218_v23, %s1063_s23  ;;  %v497_v23 = vmul.f32 2.0, %v1155_v0  ;;  %v507_v5 = vmul.f32 2.0, %v1212_v13 }
  0x67   : > { %349 = vrot.lane.b32.xlu1 %v1263_v24, %s1063_s23  ;;  %347 = vrot.lane.b32.xlu0 %v1266_v25, %s1063_s23 }
  0x68   : > { %351 = vrot.lane.b32.xlu2 %v1269_v26, %s1063_s23 }
  0x6f   : > { %355 = vrot.lane.b32.xlu1 %v1278_v27, %s1063_s23  ;;  %353 = vrot.lane.b32.xlu0 %v1281_v28, %s1063_s23 }
  0x70   : > { %357 = vrot.lane.b32.xlu2 %v1284_v29, %s1063_s23 }
  0x77   : > { %361 = vrot.lane.b32.xlu1 %v1295_v30, %s1063_s23  ;;  %359 = vrot.lane.b32.xlu0 %v1298_v31, %s1063_s23 }
  0x78   : > { %363 = vrot.lane.b32.xlu2 %v1301_v32, %s1063_s23 }
  0x7f   : > { %367 = vrot.lane.b32.xlu1 %v233_v33, %s1063_s23  ;;  %365 = vrot.lane.b32.xlu0 %v1313_v34, %s1063_s23  ;;  %v496_v33 = vmul.f32 2.0, %v1173_v4 }
  0x80   : > { %369 = vrot.lane.b32.xlu2 %v234_v35, %s1063_s23  ;;  %v498_v35 = vmul.f32 2.0, %v1170_v3 }
  0x82   : > { %v308_v36 = vpop.permute.xlu2 %307 }
  0x83   : > { %449 = vst.msk [vmem:[%s1326_s25 + $0x20] sm:$0xff] %vm443_vm0, %v308_v36 }
  0x87   : > { %373 = vrot.lane.b32.xlu1 %v1329_v37, %s1063_s23  ;;  %371 = vrot.lane.b32.xlu0 %v1332_v38, %s1063_s23 }
  0x88   : > { %375 = vrot.lane.b32.xlu2 %v1337_v39, %s1063_s23 }
  0x8a   : > { %v310_v40 = vpop.permute.xlu2 %309 }
  0x8b   : > { %450 = vst.msk [vmem:[%s1326_s25 + $0x28] sm:$0xf] %vm445_vm1, %v310_v40 }
  0x8f   : > { %379 = vrot.lane.b32.xlu1 %v1346_v41, %s1063_s23  ;;  %377 = vrot.lane.b32.xlu0 %v1349_v42, %s1063_s23 }
  0x90   : > { %381 = vrot.lane.b32.xlu2 %v1354_v43, %s1063_s23 }
  0x92   : > { %v316_v44 = vpop.permute.xlu2 %315 }
  0x93   : > { %453 = vst.msk [vmem:[%s1326_s25 + $0x40] sm:$0xff] %vm443_vm0, %v316_v44  ;;  %v545_v44 = vsub.f32 %v497_v23, %v1158_v1  ;;  %v548_v1 = vsub.f32 %v500_v54, %v1170_v3  ;;  %v504_v3 = vmul.f32 2.0, %v1201_v10  ;;  %v204_v23 = vld [vmem:[%s1148_s22 + $0x8a] sm:$0xf] }
  0x95   : > { %v552_v10 = vsub.f32 %v504_v3, %v1185_v6 }
  0x97   : > { %385 = vrot.lane.b32.xlu1 %v1363_v45, %s1063_s23  ;;  %383 = vrot.lane.b32.xlu0 %v1366_v46, %s1063_s23 }
  0x98   : > { %387 = vrot.lane.b32.xlu2 %v1371_v47, %s1063_s23 }
  0x99   : > { %v304_v48 = vpop.permute.xlu1 %303  ;;  %v300_v49 = vpop.permute.xlu0 %299 }
  0x9a   : > { %447 = vst.msk [vmem:[%s1326_s25 + $0x10] sm:$0xff] %vm443_vm0, %v304_v48  ;;  %v322_v51 = vpop.permute.xlu2 %321  ;;  %v544_v48 = vsub.f32 %v496_v33, %v190_v53 }
  0x9b   : > { %444 = vst.msk [vmem:[%s1326_s25] sm:$0xff] %vm443_vm0, %v300_v49 }
  0x9c   : > { %456 = vst.msk [vmem:[%s1326_s25 + $0x58] sm:$0xf] %vm445_vm1, %v322_v51  ;;  %v546_v51 = vsub.f32 %v498_v35, %v1173_v4 }
  0x9f   : > { %391 = vrot.lane.b32.xlu1 %v249_v52, %s1063_s23  ;;  %389 = vrot.lane.b32.xlu0 %v1384_v50, %s1063_s23  ;;  %v499_v52 = vmul.f32 2.0, %v1165_v2 }
  0xa0   : > { %393 = vrot.lane.b32.xlu2 %v250_v55, %s1063_s23  ;;  %v501_v55 = vmul.f32 2.0, %v1188_v7 }
  0xa1   : > { %v306_v61 = vpop.permute.xlu1 %305  ;;  %v302_v62 = vpop.permute.xlu0 %301  ;;  %v547_v4 = vsub.f32 %v499_v52, %v1155_v0 }
  0xa2   : > { %448 = vst.msk [vmem:[%s1326_s25 + $0x18] sm:$0xf] %vm445_vm1, %v306_v61  ;;  %v328_v11 = vpop.permute.xlu2 %327  ;;  %v549_v58 = vsub.f32 %v501_v55, %v1165_v2  ;;  %v551_v2 = vsub.f32 %v503_v60, %v1188_v7  ;;  %v203_v7 = vld [vmem:[%s1148_s22 + $0x82] sm:$0xff] }
  0xa3   : > { %446 = vst.msk [vmem:[%s1326_s25 + $0x8] sm:$0xf] %vm445_vm1, %v302_v62 }
  0xa4   : > { %459 = vst.msk [vmem:[%s1326_s25 + $0x70] sm:$0xff] %vm443_vm0, %v328_v11 }
  0xa7   : > { %639 = vrot.lane.b32.xlu1 %v542_v63, %s1063_s23  ;;  %637 = vrot.lane.b32.xlu0 %v541_v9, %s1063_s23  ;;  %v206_v63 = vld [vmem:[%s1148_s22 + $0x9a] sm:$0xf]  ;;  %v205_v9 = vld [vmem:[%s1148_s22 + $0x92] sm:$0xff] }
  0xa8   : > { %641 = vrot.lane.b32.xlu2 %v543_v21, %s1063_s23  ;;  %v506_v11 = vmul.f32 2.0, %v206_v63  ;;  %v505_v21 = vmul.f32 2.0, %v205_v9 }
  0xa9   : > { %v314_v36 = vpop.permute.xlu1 %313  ;;  %v312_v40 = vpop.permute.xlu0 %311 }
  0xaa   : > { %452 = vst.msk [vmem:[%s1326_s25 + $0x38] sm:$0xf] %vm445_vm1, %v314_v36  ;;  %v334_v49 = vpop.permute.xlu2 %333  ;;  %v554_v6 = vsub.f32 %v506_v11, %v204_v23  ;;  %v553_v36 = vsub.f32 %v505_v21, %v203_v7  ;;  %v220_v21 = vld [vmem:[%s1148_s22 + $0x10a] sm:$0xf] }
  0xab   : > { %451 = vst.msk [vmem:[%s1326_s25 + $0x30] sm:$0xff] %vm443_vm0, %v312_v40 }
  0xac   : > { %462 = vst.msk [vmem:[%s1326_s25 + $0x88] sm:$0xf] %vm445_vm1, %v334_v49  ;;  %v509_v49 = vmul.f32 2.0, %v1215_v14 }
  0xae   : > { %v557_v55 = vsub.f32 %v509_v49, %v1212_v13 }
  0xaf   : > { %645 = vrot.lane.b32.xlu1 %v545_v44, %s1063_s23  ;;  %643 = vrot.lane.b32.xlu0 %v544_v48, %s1063_s23  ;;  %v555_v44 = vsub.f32 %v507_v5, %v205_v9  ;;  %v508_v48 = vmul.f32 2.0, %v1209_v12  ;;  %v221_v9 = vld [vmem:[%s1148_s22 + $0x112] sm:$0xff] }
  0xb0   : > { %647 = vrot.lane.b32.xlu2 %v546_v51, %s1063_s23  ;;  %v510_v51 = vmul.f32 2.0, %v1227_v16  ;;  %v517_v11 = vmul.f32 2.0, %v221_v9 }
  0xb1   : > { %v320_v56 = vpop.permute.xlu1 %319  ;;  %v318_v57 = vpop.permute.xlu0 %317 }
  0xb2   : > { %455 = vst.msk [vmem:[%s1326_s25 + $0x50] sm:$0xff] %vm443_vm0, %v320_v56  ;;  %v340_v53 = vpop.permute.xlu2 %339  ;;  %v556_v56 = vsub.f32 %v508_v48, %v206_v63  ;;  %v222_v63 = vld [vmem:[%s1148_s22 + $0x11a] sm:$0xf] }
  0xb3   : > { %454 = vst.msk [vmem:[%s1326_s25 + $0x48] sm:$0xf] %vm445_vm1, %v318_v57 }
  0xb4   : > { %465 = vst.msk [vmem:[%s1326_s25 + $0xa0] sm:$0xff] %vm443_vm0, %v340_v53  ;;  %v512_v53 = vmul.f32 2.0, %v1230_v17 }
  0xb7   : > { %651 = vrot.lane.b32.xlu1 %v548_v1, %s1063_s23  ;;  %649 = vrot.lane.b32.xlu0 %v547_v4, %s1063_s23  ;;  %v558_v1 = vsub.f32 %v510_v51, %v1209_v12  ;;  %v511_v4 = vmul.f32 2.0, %v1224_v15  ;;  %v560_v12 = vsub.f32 %v512_v53, %v1227_v16  ;;  %v516_v16 = vmul.f32 2.0, %v1255_v22 }
  0xb8   : > { %653 = vrot.lane.b32.xlu2 %v549_v58, %s1063_s23  ;;  %v513_v58 = vmul.f32 2.0, %v1242_v19 }
  0xb9   : > { %v326_v61 = vpop.permute.xlu1 %325  ;;  %v324_v0 = vpop.permute.xlu0 %323  ;;  %v559_v13 = vsub.f32 %v511_v4, %v1215_v14  ;;  %v564_v22 = vsub.f32 %v516_v16, %v1239_v18  ;;  %v236_v16 = vld [vmem:[%s1148_s22 + $0x18a] sm:$0xf] }
  0xba   : > { %458 = vst.msk [vmem:[%s1326_s25 + $0x68] sm:$0xf] %vm445_vm1, %v326_v61  ;;  %v346_v62 = vpop.permute.xlu2 %345  ;;  %v561_v61 = vsub.f32 %v513_v58, %v1224_v15 }
  0xbb   : > { %457 = vst.msk [vmem:[%s1326_s25 + $0x60] sm:$0xff] %vm443_vm0, %v324_v0  ;;  %v514_v0 = vmul.f32 2.0, %v1239_v18 }
  0xbc   : > { %468 = vst.msk [vmem:[%s1326_s25 + $0xb8] sm:$0xf] %vm445_vm1, %v346_v62 }
  0xbf   : > { %657 = vrot.lane.b32.xlu1 %v551_v2, %s1063_s23  ;;  %655 = vrot.lane.b32.xlu0 %v550_v8, %s1063_s23  ;;  %v515_v2 = vmul.f32 2.0, %v1245_v20  ;;  %v562_v20 = vsub.f32 %v514_v0, %v1230_v17  ;;  %v519_v17 = vmul.f32 2.0, %v1266_v25 }
  0xc0   : > { %659 = vrot.lane.b32.xlu2 %v552_v10, %s1063_s23  ;;  %v518_v10 = vmul.f32 2.0, %v222_v63 }
  0xc1   : > { %v332_v33 = vpop.permute.xlu1 %331  ;;  %v330_v35 = vpop.permute.xlu0 %329  ;;  %v563_v15 = vsub.f32 %v515_v2, %v1242_v19  ;;  %v219_v19 = vld [vmem:[%s1148_s22 + $0x102] sm:$0xff] }
  0xc2   : > { %461 = vst.msk [vmem:[%s1326_s25 + $0x80] sm:$0xff] %vm443_vm0, %v332_v33  ;;  %v352_v40 = vpop.permute.xlu2 %351  ;;  %v566_v18 = vsub.f32 %v518_v10, %v220_v21  ;;  %v565_v5 = vsub.f32 %v517_v11, %v219_v19 }
  0xc3   : > { %460 = vst.msk [vmem:[%s1326_s25 + $0x78] sm:$0xf] %vm445_vm1, %v330_v35  ;;  %v567_v35 = vsub.f32 %v519_v17, %v221_v9  ;;  %v533_v9 = vmul.f32 2.0, %v1337_v39 }
  0xc4   : > { %471 = vst.msk [vmem:[%s1326_s25 + $0xd0] sm:$0xff] %vm443_vm0, %v352_v40  ;;  %v522_v40 = vmul.f32 2.0, %v1281_v28 }
  0xc5   : > { %v581_v21 = vsub.f32 %v533_v9, %v1332_v38 }
  0xc7   : > { %663 = vrot.lane.b32.xlu1 %v554_v6, %s1063_s23  ;;  %661 = vrot.lane.b32.xlu0 %v553_v36, %s1063_s23  ;;  %v520_v6 = vmul.f32 2.0, %v1263_v24  ;;  %v521_v36 = vmul.f32 2.0, %v1269_v26 }
  0xc8   : > { %665 = vrot.lane.b32.xlu2 %v555_v44, %s1063_s23 }
  0xc9   : > { %v338_v52 = vpop.permute.xlu1 %337  ;;  %v336_v54 = vpop.permute.xlu0 %335  ;;  %v569_v49 = vsub.f32 %v521_v36, %v1266_v25  ;;  %v568_v51 = vsub.f32 %v520_v6, %v222_v63  ;;  %v532_v63 = vmul.f32 2.0, %v1329_v37 }
  0xca   : > { %464 = vst.msk [vmem:[%s1326_s25 + $0x98] sm:$0xf] %vm445_vm1, %v338_v52  ;;  %v358_v57 = vpop.permute.xlu2 %357 }
  0xcb   : > { %463 = vst.msk [vmem:[%s1326_s25 + $0x90] sm:$0xff] %vm443_vm0, %v336_v54  ;;  %v570_v54 = vsub.f32 %v522_v40, %v1263_v24  ;;  %v538_v40 = vmul.f32 2.0, %v1363_v45 }
  0xcc   : > { %474 = vst.msk [vmem:[%s1326_s25 + $0xe8] sm:$0xf] %vm445_vm1, %v358_v57  ;;  %v525_v57 = vmul.f32 2.0, %v1298_v31 }
  0xce   : > { %v573_v58 = vsub.f32 %v525_v57, %v1278_v27 }
  0xcf   : > { %669 = vrot.lane.b32.xlu1 %v557_v55, %s1063_s23  ;;  %667 = vrot.lane.b32.xlu0 %v556_v56, %s1063_s23  ;;  %v523_v55 = vmul.f32 2.0, %v1278_v27  ;;  %v524_v56 = vmul.f32 2.0, %v1284_v29 }
  0xd0   : > { %671 = vrot.lane.b32.xlu2 %v558_v1, %s1063_s23 }
  0xd1   : > { %v344_v59 = vpop.permute.xlu1 %343  ;;  %v342_v60 = vpop.permute.xlu0 %341  ;;  %v572_v24 = vsub.f32 %v524_v56, %v1281_v28  ;;  %v571_v25 = vsub.f32 %v523_v55, %v1269_v26  ;;  %v528_v28 = vmul.f32 2.0, %v1313_v34  ;;  %v237_v34 = vld [vmem:[%s1148_s22 + $0x192] sm:$0xff] }
  0xd2   : > { %467 = vst.msk [vmem:[%s1326_s25 + $0xb0] sm:$0xff] %vm443_vm0, %v344_v59  ;;  %v364_v3 = vpop.permute.xlu2 %363  ;;  %v526_v59 = vmul.f32 2.0, %v1295_v30  ;;  %v529_v2 = vmul.f32 2.0, %v237_v34 }
  0xd3   : > { %466 = vst.msk [vmem:[%s1326_s25 + $0xa8] sm:$0xf] %vm445_vm1, %v342_v60  ;;  %v527_v60 = vmul.f32 2.0, %v1301_v32 }
  0xd4   : > { %477 = vst.msk [vmem:[%s1326_s25 + $0x100] sm:$0xff] %vm443_vm0, %v364_v3  ;;  %v574_v32 = vsub.f32 %v526_v59, %v1284_v29  ;;  %v238_v3 = vld [vmem:[%s1148_s22 + $0x19a] sm:$0xf]  ;;  %v531_v29 = vmul.f32 2.0, %v1332_v38 }
  0xd5   : > { %v575_v27 = vsub.f32 %v527_v60, %v1298_v31  ;;  %v530_v0 = vmul.f32 2.0, %v238_v3  ;;  %v235_v31 = vld [vmem:[%s1148_s22 + $0x182] sm:$0xff]  ;;  %v580_v19 = vsub.f32 %v532_v63, %v238_v3 }
  0xd7   : > { %675 = vrot.lane.b32.xlu1 %v560_v12, %s1063_s23  ;;  %673 = vrot.lane.b32.xlu0 %v559_v13, %s1063_s23 }
  0xd8   : > { %677 = vrot.lane.b32.xlu2 %v561_v61, %s1063_s23  ;;  %v576_v61 = vsub.f32 %v528_v28, %v1295_v30  ;;  %v578_v30 = vsub.f32 %v530_v0, %v236_v16 }
  0xd9   : > { %v350_v8 = vpop.permute.xlu1 %349  ;;  %v348_v14 = vpop.permute.xlu0 %347 }
  0xda   : > { %470 = vst.msk [vmem:[%s1326_s25 + $0xc8] sm:$0xf] %vm445_vm1, %v350_v8  ;;  %v370_v62 = vpop.permute.xlu2 %369 }
  0xdb   : > { %469 = vst.msk [vmem:[%s1326_s25 + $0xc0] sm:$0xff] %vm443_vm0, %v348_v14 }
  0xdc   : > { %480 = vst.msk [vmem:[%s1326_s25 + $0x118] sm:$0xf] %vm445_vm1, %v370_v62  ;;  %v579_v62 = vsub.f32 %v531_v29, %v237_v34 }
  0xdf   : > { %681 = vrot.lane.b32.xlu1 %v563_v15, %s1063_s23  ;;  %679 = vrot.lane.b32.xlu0 %v562_v20, %s1063_s23  ;;  %v577_v15 = vsub.f32 %v529_v2, %v235_v31 }
  0xe0   : > { %683 = vrot.lane.b32.xlu2 %v564_v22, %s1063_s23  ;;  %v534_v22 = vmul.f32 2.0, %v1349_v42 }
  0xe1   : > { %v356_v23 = vpop.permute.xlu1 %355  ;;  %v354_v7 = vpop.permute.xlu0 %353 }
  0xe2   : > { %473 = vst.msk [vmem:[%s1326_s25 + $0xe0] sm:$0xff] %vm443_vm0, %v356_v23  ;;  %v376_v33 = vpop.permute.xlu2 %375  ;;  %v582_v23 = vsub.f32 %v534_v22, %v1329_v37 }
  0xe3   : > { %472 = vst.msk [vmem:[%s1326_s25 + $0xd8] sm:$0xf] %vm445_vm1, %v354_v7  ;;  %v535_v7 = vmul.f32 2.0, %v1346_v41 }
  0xe4   : > { %483 = vst.msk [vmem:[%s1326_s25 + $0x130] sm:$0xff] %vm443_vm0, %v376_v33 }
  0xe5   : > { %v583_v38 = vsub.f32 %v535_v7, %v1337_v39 }
  0xe7   : > { %687 = vrot.lane.b32.xlu1 %v566_v18, %s1063_s23  ;;  %685 = vrot.lane.b32.xlu0 %v565_v5, %s1063_s23  ;;  %v536_v18 = vmul.f32 2.0, %v1354_v43  ;;  %v537_v5 = vmul.f32 2.0, %v1366_v46 }
  0xe8   : > { %689 = vrot.lane.b32.xlu2 %v567_v35, %s1063_s23 }
  0xe9   : > { %v362_v44 = vpop.permute.xlu1 %361  ;;  %v360_v48 = vpop.permute.xlu0 %359  ;;  %v584_v37 = vsub.f32 %v536_v18, %v1349_v42  ;;  %v585_v36 = vsub.f32 %v537_v5, %v1346_v41 }
  0xea   : > { %476 = vst.msk [vmem:[%s1326_s25 + $0xf8] sm:$0xf] %vm445_vm1, %v362_v44  ;;  %v382_v52 = vpop.permute.xlu2 %381  ;;  %v539_v44 = vmul.f32 2.0, %v1371_v47  ;;  %v586_v47 = vsub.f32 %v538_v40, %v1354_v43 }
  0xeb   : > { %475 = vst.msk [vmem:[%s1326_s25 + $0xf0] sm:$0xff] %vm443_vm0, %v360_v48  ;;  %v540_v48 = vmul.f32 2.0, %v1384_v50 }
  0xec   : > { %486 = vst.msk [vmem:[%s1326_s25 + $0x148] sm:$0xf] %vm445_vm1, %v382_v52  ;;  %v587_v41 = vsub.f32 %v539_v44, %v1366_v46 }
  0xed   : > { %v588_v50 = vsub.f32 %v540_v48, %v1363_v45 }
  0xef   : > { %693 = vrot.lane.b32.xlu1 %v569_v49, %s1063_s23  ;;  %691 = vrot.lane.b32.xlu0 %v568_v51, %s1063_s23 }
  0xf0   : > { %695 = vrot.lane.b32.xlu2 %v570_v54, %s1063_s23 }
  0xf1   : > { %v368_v1 = vpop.permute.xlu1 %367  ;;  %v366_v4 = vpop.permute.xlu0 %365 }
  0xf2   : > { %479 = vst.msk [vmem:[%s1326_s25 + $0x110] sm:$0xff] %vm443_vm0, %v368_v1  ;;  %v388_v53 = vpop.permute.xlu2 %387 }
  0xf3   : > { %478 = vst.msk [vmem:[%s1326_s25 + $0x108] sm:$0xf] %vm445_vm1, %v366_v4 }
  0xf4   : > { %489 = vst.msk [vmem:[%s1326_s25 + $0x160] sm:$0xff] %vm443_vm0, %v388_v53 }
  0xf7   : > { %699 = vrot.lane.b32.xlu1 %v572_v24, %s1063_s23  ;;  %697 = vrot.lane.b32.xlu0 %v571_v25, %s1063_s23 }
  0xf8   : > { %701 = vrot.lane.b32.xlu2 %v573_v58, %s1063_s23 }
  0xf9   : > { %v374_v12 = vpop.permute.xlu1 %373  ;;  %v372_v26 = vpop.permute.xlu0 %371 }
  0xfa   : > { %482 = vst.msk [vmem:[%s1326_s25 + $0x128] sm:$0xf] %vm445_vm1, %v374_v12  ;;  %v394_v13 = vpop.permute.xlu2 %393 }
  0xfb   : > { %481 = vst.msk [vmem:[%s1326_s25 + $0x120] sm:$0xff] %vm443_vm0, %v372_v26 }
  0xfc   : > { %492 = vst.msk [vmem:[%s1326_s25 + $0x178] sm:$0xf] %vm445_vm1, %v394_v13 }
  0xff   : > { %705 = vrot.lane.b32.xlu1 %v575_v27, %s1063_s23  ;;  %703 = vrot.lane.b32.xlu0 %v574_v32, %s1063_s23 }
 0x100   : > { %707 = vrot.lane.b32.xlu2 %v576_v61, %s1063_s23 }
 0x101   : > { %v380_v8 = vpop.permute.xlu1 %379  ;;  %v378_v14 = vpop.permute.xlu0 %377 }
 0x102   : > { %485 = vst.msk [vmem:[%s1326_s25 + $0x140] sm:$0xff] %vm443_vm0, %v380_v8  ;;  %v642_v20 = vpop.permute.xlu2 %641 }
 0x103   : > { %484 = vst.msk [vmem:[%s1326_s25 + $0x138] sm:$0xf] %vm445_vm1, %v378_v14 }
 0x104   : > { %783 = vst.msk [vmem:[%s1578_s28 + $0x10] sm:$0xff] %vm443_vm0, %v642_v20 }
 0x107   : > { %711 = vrot.lane.b32.xlu1 %v578_v30, %s1063_s23  ;;  %709 = vrot.lane.b32.xlu0 %v577_v15, %s1063_s23 }
 0x108   : > { %713 = vrot.lane.b32.xlu2 %v579_v62, %s1063_s23 }
 0x109   : > { %v386_v10 = vpop.permute.xlu1 %385  ;;  %v384_v11 = vpop.permute.xlu0 %383 }
 0x10a   : > { %488 = vst.msk [vmem:[%s1326_s25 + $0x158] sm:$0xf] %vm445_vm1, %v386_v10  ;;  %v648_v17 = vpop.permute.xlu2 %647 }
 0x10b   : > { %487 = vst.msk [vmem:[%s1326_s25 + $0x150] sm:$0xff] %vm443_vm0, %v384_v11 }
 0x10c   : > { %786 = vst.msk [vmem:[%s1578_s28 + $0x28] sm:$0xf] %vm445_vm1, %v648_v17 }
 0x10f   : > { %717 = vrot.lane.b32.xlu1 %v581_v21, %s1063_s23  ;;  %715 = vrot.lane.b32.xlu0 %v580_v19, %s1063_s23 }
 0x110   : > { %719 = vrot.lane.b32.xlu2 %v582_v23, %s1063_s23 }
 0x111   : > { %v392_v33 = vpop.permute.xlu1 %391  ;;  %v390_v35 = vpop.permute.xlu0 %389 }
 0x112   : > { %491 = vst.msk [vmem:[%s1326_s25 + $0x170] sm:$0xff] %vm443_vm0, %v392_v33  ;;  %v654_v6 = vpop.permute.xlu2 %653 }
 0x113   : > { %490 = vst.msk [vmem:[%s1326_s25 + $0x168] sm:$0xf] %vm445_vm1, %v390_v35 }
 0x114   : > { %789 = vst.msk [vmem:[%s1578_s28 + $0x40] sm:$0xff] %vm443_vm0, %v654_v6 }
 0x117   : > { %723 = vrot.lane.b32.xlu1 %v584_v37, %s1063_s23  ;;  %721 = vrot.lane.b32.xlu0 %v583_v38, %s1063_s23 }
 0x118   : > { %725 = vrot.lane.b32.xlu2 %v585_v36, %s1063_s23 }
 0x119   : > { %v640_v42 = vpop.permute.xlu1 %639  ;;  %v638_v39 = vpop.permute.xlu0 %637 }
 0x11a   : > { %782 = vst.msk [vmem:[%s1578_s28 + $0x8] sm:$0xf] %vm445_vm1, %v640_v42  ;;  %v660_v49 = vpop.permute.xlu2 %659 }
 0x11b   : > { %781 = vst.msk [vmem:[%s1578_s28] sm:$0xff] %vm443_vm0, %v638_v39 }
 0x11c   : > { %792 = vst.msk [vmem:[%s1578_s28 + $0x58] sm:$0xf] %vm445_vm1, %v660_v49 }
 0x11f   : > { %729 = vrot.lane.b32.xlu1 %v587_v41, %s1063_s23  ;;  %727 = vrot.lane.b32.xlu0 %v586_v47, %s1063_s23 }
 0x120   : > { %731 = vrot.lane.b32.xlu2 %v588_v50, %s1063_s23 }
 0x121   : > { %v646_v51 = vpop.permute.xlu1 %645  ;;  %v644_v52 = vpop.permute.xlu0 %643 }
 0x122   : > { %785 = vst.msk [vmem:[%s1578_s28 + $0x20] sm:$0xff] %vm443_vm0, %v646_v51  ;;  %v666_v43 = vpop.permute.xlu2 %665 }
 0x123   : > { %784 = vst.msk [vmem:[%s1578_s28 + $0x18] sm:$0xf] %vm445_vm1, %v644_v52 }
 0x124   : > { %795 = vst.msk [vmem:[%s1578_s28 + $0x70] sm:$0xff] %vm443_vm0, %v666_v43 }
 0x129   : > { %v652_v45 = vpop.permute.xlu1 %651  ;;  %v650_v46 = vpop.permute.xlu0 %649 }
 0x12a   : > { %788 = vst.msk [vmem:[%s1578_s28 + $0x38] sm:$0xf] %vm445_vm1, %v652_v45  ;;  %v672_v54 = vpop.permute.xlu2 %671 }
 0x12b   : > { %787 = vst.msk [vmem:[%s1578_s28 + $0x30] sm:$0xff] %vm443_vm0, %v650_v46 }
 0x12c   : > { %798 = vst.msk [vmem:[%s1578_s28 + $0x88] sm:$0xf] %vm445_vm1, %v672_v54 }
 0x131   : > { %v658_v55 = vpop.permute.xlu1 %657  ;;  %v656_v56 = vpop.permute.xlu0 %655 }
 0x132   : > { %791 = vst.msk [vmem:[%s1578_s28 + $0x50] sm:$0xff] %vm443_vm0, %v658_v55  ;;  %v678_v57 = vpop.permute.xlu2 %677 }
 0x133   : > { %790 = vst.msk [vmem:[%s1578_s28 + $0x48] sm:$0xf] %vm445_vm1, %v656_v56 }
 0x134   : > { %801 = vst.msk [vmem:[%s1578_s28 + $0xa0] sm:$0xff] %vm443_vm0, %v678_v57 }
 0x139   : > { %v664_v1 = vpop.permute.xlu1 %663  ;;  %v662_v4 = vpop.permute.xlu0 %661 }
 0x13a   : > { %794 = vst.msk [vmem:[%s1578_s28 + $0x68] sm:$0xf] %vm445_vm1, %v664_v1  ;;  %v684_v24 = vpop.permute.xlu2 %683 }
 0x13b   : > { %793 = vst.msk [vmem:[%s1578_s28 + $0x60] sm:$0xff] %vm443_vm0, %v662_v4 }
 0x13c   : > { %804 = vst.msk [vmem:[%s1578_s28 + $0xb8] sm:$0xf] %vm445_vm1, %v684_v24 }
 0x141   : > { %v670_v25 = vpop.permute.xlu1 %669  ;;  %v668_v53 = vpop.permute.xlu0 %667 }
 0x142   : > { %797 = vst.msk [vmem:[%s1578_s28 + $0x80] sm:$0xff] %vm443_vm0, %v670_v25  ;;  %v690_v58 = vpop.permute.xlu2 %689 }
 0x143   : > { %796 = vst.msk [vmem:[%s1578_s28 + $0x78] sm:$0xf] %vm445_vm1, %v668_v53 }
 0x144   : > { %807 = vst.msk [vmem:[%s1578_s28 + $0xd0] sm:$0xff] %vm443_vm0, %v690_v58 }
 0x149   : > { %v676_v59 = vpop.permute.xlu1 %675  ;;  %v674_v60 = vpop.permute.xlu0 %673 }
 0x14a   : > { %800 = vst.msk [vmem:[%s1578_s28 + $0x98] sm:$0xf] %vm445_vm1, %v676_v59  ;;  %v696_v28 = vpop.permute.xlu2 %695 }
 0x14b   : > { %799 = vst.msk [vmem:[%s1578_s28 + $0x90] sm:$0xff] %vm443_vm0, %v674_v60 }
 0x14c   : > { %810 = vst.msk [vmem:[%s1578_s28 + $0xe8] sm:$0xf] %vm445_vm1, %v696_v28 }
 0x151   : > { %v682_v12 = vpop.permute.xlu1 %681  ;;  %v680_v26 = vpop.permute.xlu0 %679 }
 0x152   : > { %803 = vst.msk [vmem:[%s1578_s28 + $0xb0] sm:$0xff] %vm443_vm0, %v682_v12  ;;  %v702_v27 = vpop.permute.xlu2 %701 }
 0x153   : > { %802 = vst.msk [vmem:[%s1578_s28 + $0xa8] sm:$0xf] %vm445_vm1, %v680_v26 }
 0x154   : > { %813 = vst.msk [vmem:[%s1578_s28 + $0x100] sm:$0xff] %vm443_vm0, %v702_v27 }
 0x159   : > { %v688_v32 = vpop.permute.xlu1 %687  ;;  %v686_v13 = vpop.permute.xlu0 %685 }
 0x15a   : > { %806 = vst.msk [vmem:[%s1578_s28 + $0xc8] sm:$0xf] %vm445_vm1, %v688_v32  ;;  %v708_v3 = vpop.permute.xlu2 %707 }
 0x15b   : > { %805 = vst.msk [vmem:[%s1578_s28 + $0xc0] sm:$0xff] %vm443_vm0, %v686_v13 }
 0x15c   : > { %816 = vst.msk [vmem:[%s1578_s28 + $0x118] sm:$0xf] %vm445_vm1, %v708_v3 }
 0x161   : > { %v694_v34 = vpop.permute.xlu1 %693  ;;  %v692_v61 = vpop.permute.xlu0 %691 }
 0x162   : > { %809 = vst.msk [vmem:[%s1578_s28 + $0xe0] sm:$0xff] %vm443_vm0, %v694_v34  ;;  %v714_v0 = vpop.permute.xlu2 %713 }
 0x163   : > { %808 = vst.msk [vmem:[%s1578_s28 + $0xd8] sm:$0xf] %vm445_vm1, %v692_v61 }
 0x164   : > { %819 = vst.msk [vmem:[%s1578_s28 + $0x130] sm:$0xff] %vm443_vm0, %v714_v0 }
 0x169   : > { %v700_v2 = vpop.permute.xlu1 %699  ;;  %v698_v16 = vpop.permute.xlu0 %697 }
 0x16a   : > { %812 = vst.msk [vmem:[%s1578_s28 + $0xf8] sm:$0xf] %vm445_vm1, %v700_v2  ;;  %v720_v31 = vpop.permute.xlu2 %719 }
 0x16b   : > { %811 = vst.msk [vmem:[%s1578_s28 + $0xf0] sm:$0xff] %vm443_vm0, %v698_v16 }
 0x16c   : > { %822 = vst.msk [vmem:[%s1578_s28 + $0x148] sm:$0xf] %vm445_vm1, %v720_v31 }
 0x171   : > { %v706_v29 = vpop.permute.xlu1 %705  ;;  %v704_v8 = vpop.permute.xlu0 %703 }
 0x172   : > { %815 = vst.msk [vmem:[%s1578_s28 + $0x110] sm:$0xff] %vm443_vm0, %v706_v29  ;;  %v726_v14 = vpop.permute.xlu2 %725 }
 0x173   : > { %814 = vst.msk [vmem:[%s1578_s28 + $0x108] sm:$0xf] %vm445_vm1, %v704_v8 }
 0x174   : > { %825 = vst.msk [vmem:[%s1578_s28 + $0x160] sm:$0xff] %vm443_vm0, %v726_v14 }
 0x179   : > { %v712_v30 = vpop.permute.xlu1 %711  ;;  %v710_v15 = vpop.permute.xlu0 %709 }
 0x17a   : > { %818 = vst.msk [vmem:[%s1578_s28 + $0x128] sm:$0xf] %vm445_vm1, %v712_v30  ;;  %v732_v20 = vpop.permute.xlu2 %731 }
 0x17b   : > { %817 = vst.msk [vmem:[%s1578_s28 + $0x120] sm:$0xff] %vm443_vm0, %v710_v15 }
 0x17c   : > { %828 = vst.msk [vmem:[%s1578_s28 + $0x178] sm:$0xf] %vm445_vm1, %v732_v20 }
 0x181   : > { %v718_v62 = vpop.permute.xlu1 %717  ;;  %v716_v63 = vpop.permute.xlu0 %715 }
 0x182   : > { %821 = vst.msk [vmem:[%s1578_s28 + $0x140] sm:$0xff] %vm443_vm0, %v718_v62 }
 0x183   : > { %820 = vst.msk [vmem:[%s1578_s28 + $0x138] sm:$0xf] %vm445_vm1, %v716_v63 }
 0x189   : > { %v724_v9 = vpop.permute.xlu1 %723  ;;  %v722_v22 = vpop.permute.xlu0 %721 }
 0x18a   : > { %824 = vst.msk [vmem:[%s1578_s28 + $0x158] sm:$0xf] %vm445_vm1, %v724_v9 }
 0x18b   : > { %823 = vst.msk [vmem:[%s1578_s28 + $0x150] sm:$0xff] %vm443_vm0, %v722_v22 }
 0x191   : > { %v730_v10 = vpop.permute.xlu1 %729  ;;  %v728_v11 = vpop.permute.xlu0 %727 }
 0x192   : > { %827 = vst.msk [vmem:[%s1578_s28 + $0x170] sm:$0xff] %vm443_vm0, %v730_v10 }
 0x193   : > { %826 = vst.msk [vmem:[%s1578_s28 + $0x168] sm:$0xf] %vm445_vm1, %v728_v11 }
 0x194 PF: > { %p13_p7 = scmp.ge.s32.totalorder %s1099_s14, 4   ;;  %s1736_s9 = smov %s1051_s10 }
 0x195   : > { %s1737_s10 = smov %s1055_s11  ;;  %s1738_s11 = smov %s1109_s17 }
 0x196   : > { %s1739_s12 = smov %s1099_s14  ;;  %15 = sbr.rel (!%p13_p7) target bundleno = 3 (0x3), region = 76 }
 0x19b   :  { %872 = vsyncpa [#allocation3], 1 }
 0x19c   :  { %874 = vsyncpa [#allocation3 + $0x1], 1 }

</bundles_post_ra>
